<compile_context>
chip_gen: v5e
topology: v5e:2x2
jax: 0.10.0
libtpu: 0.0.40
codegen_flags: <defaults>
</compile_context>

<pallas_src>
import functools

import jax
import jax.numpy as jnp
from jax.experimental import pallas as pl
from jax.experimental.pallas import tpu as pltpu

_LANES = 128
_SUBLANE_ALIGN = 32   # multiple of the min sublane tiling for f32/bf16/int16/int8


def _iou_kernel(x_ref, t_ref, inter_ref, total_ref, *,
                steps_per_split, valid_rows, ragged):
    """Processes one (TS, W) spatial slab of one batch element.

    x_ref:     (1, C, TS, W)  logits in their native dtype
    t_ref:     (1, 1, TS, W)  integer class ids
    inter_ref: (1, 1, C, W)   f32 partial sums, resident across the step axis
    total_ref: (1, 1, C, W)   f32 partial sums, resident across the step axis
    """
    h = pl.program_id(1)
    s = pl.program_id(2)

    @pl.when(s == 0)
    def _init():
        inter_ref[...] = jnp.zeros_like(inter_ref)
        total_ref[...] = jnp.zeros_like(total_ref)

    C, TS, W = x_ref.shape[1], x_ref.shape[2], x_ref.shape[3]

    # Softmax over the channel axis.  C is the major (non-vreg) axis, so the
    # max / sum are elementwise VPU ops over C fully packed (TS, W) planes.
    # The running max is computed in the native dtype (max is exact); the cast
    # to f32 is folded into the exp inputs so no full f32 tile copy persists.
    m = x_ref[0, 0]
    for c in range(1, C):
        m = jnp.maximum(m, x_ref[0, c])
    m = m.astype(jnp.float32)

    es = [jnp.exp(x_ref[0, c].astype(jnp.float32) - m) for c in range(C)]
    denom = es[0]
    for c in range(1, C):
        denom = denom + es[c]
    inv = pl.reciprocal(denom, approx=False)     # exact; EUP slot, one per pixel

    t = t_ref[0, 0].astype(jnp.int32)            # no-op for int32 targets
    if ragged:
        # The last row-block is partial; rows past the image end hold stale
        # VMEM garbage.  Neutralize them via the global row index.
        start = (h * steps_per_split + s) * TS
        n_ok = valid_rows - start                # scalar; >= TS except last block
        row = jax.lax.broadcasted_iota(jnp.int32, (TS, W), 0)
        valid = row < n_ok
        t = jnp.where(valid, t, -1)              # -1 never matches a class

    # Per-class masked sums.  The class mask is a scalar compare per class (no
    # materialized (C, TS, W) iota).  The sublane reduction runs on the
    # otherwise-idle MXU: ones(1, TS) @ plane -> (1, W) lane partials.
    ones_row = jnp.ones((1, TS), dtype=jnp.float32)
    inter_parts = []
    total_parts = []
    for c in range(C):
        p_c = es[c] * inv
        mask_c = t == c
        if ragged:
            p_ok = jnp.where(valid, p_c, 0.0)
        else:
            p_ok = p_c
        inter_plane = jnp.where(mask_c, p_c, 0.0)
        total_plane = jnp.where(mask_c, p_c + 1.0, p_ok)   # softmax mass + one-hot count
        inter_parts.append(
            jnp.dot(ones_row, inter_plane, preferred_element_type=jnp.float32))
        total_parts.append(
            jnp.dot(ones_row, total_plane, preferred_element_type=jnp.float32))

    inter_ref[0, 0] += jnp.concatenate(inter_parts, axis=0)   # (C, W)
    total_ref[0, 0] += jnp.concatenate(total_parts, axis=0)   # (C, W)


def _vmem_capacity_bytes():
    try:
        return int(pltpu.get_tpu_info().vmem_capacity_bytes)
    except Exception:
        return 64 << 20   # conservative (v7x-sized) fallback


def _choose_tile_rows(C, H, W, vmem_cap, max_tile_rows, prefer_even_blocks):
    """Rows per spatial block, sized off the per-row f32 working set."""
    lanes = pl.cdiv(W, _LANES) * _LANES
    row_bytes = C * lanes * 4                      # f32 working set of one image row
    # Bigger tiles on 128-MiB VMEM parts (v5e/v6e), conservative on v7x (64 MiB).
    target = (4 << 20) if vmem_cap >= (100 << 20) else (3 << 19)
    ts = max(_SUBLANE_ALIGN, (target // row_bytes) // _SUBLANE_ALIGN * _SUBLANE_ALIGN)
    ts = min(ts, 4096)
    if max_tile_rows is not None:
        ts = min(ts, max(_SUBLANE_ALIGN,
                         max_tile_rows // _SUBLANE_ALIGN * _SUBLANE_ALIGN))
    if ts >= H:
        return H                                   # single full-extent block
    if prefer_even_blocks and pl.cdiv(H, ts) % 2 == 1:
        # Try to land on an even block count so the spatial axis can be split
        # across both v7x TensorCores.
        nt2 = pl.cdiv(H, ts) + 1
        ts2 = pl.cdiv(pl.cdiv(H, nt2), _SUBLANE_ALIGN) * _SUBLANE_ALIGN
        if _SUBLANE_ALIGN <= ts2 < H and pl.cdiv(H, ts2) % 2 == 0:
            ts = ts2
    return ts


def iou_loss(outputs, targets, n_class, *, max_tile_rows=None):
    """outputs: (B, C, H, W) float logits; targets: (B, H, W) integer class ids."""
    B, C, H, W = outputs.shape
    assert C == n_class

    # Targets go in at their native integer width: int8 targets cut their HBM
    # traffic 4x vs int32 (produce them as int8 upstream when n_class <= 127).
    # Only unsupported dtypes are widened here.
    if targets.dtype not in (jnp.int8, jnp.int16, jnp.int32):
        targets = targets.astype(jnp.int32)
    t = targets.reshape(B, 1, H, W)                # leading-dim reshape only: free

    vmem_cap = _vmem_capacity_bytes()
    prefer_even = (B % 2 == 1)                     # odd batch: split space over 2 cores
    TS = _choose_tile_rows(C, H, W, vmem_cap, max_tile_rows, prefer_even)
    num_blocks = pl.cdiv(H, TS)
    ragged = (H % TS) != 0
    nsplit = 2 if (prefer_even and num_blocks % 2 == 0 and num_blocks >= 2) else 1
    steps = num_blocks // nsplit

    kernel = functools.partial(
        _iou_kernel, steps_per_split=steps, valid_rows=H, ragged=ragged)

    x_item = jnp.dtype(outputs.dtype).itemsize
    t_item = jnp.dtype(t.dtype).itemsize

    inter, total = pl.pallas_call(
        kernel,
        out_shape=(
            jax.ShapeDtypeStruct((B, nsplit, C, W), jnp.float32),
            jax.ShapeDtypeStruct((B, nsplit, C, W), jnp.float32),
        ),
        grid_spec=pltpu.PrefetchScalarGridSpec(
            num_scalar_prefetch=0,
            grid=(B, nsplit, steps),
            in_specs=[
                pl.BlockSpec((1, C, TS, W), lambda b, h, s: (b, 0, h * steps + s, 0)),
                pl.BlockSpec((1, 1, TS, W), lambda b, h, s: (b, 0, h * steps + s, 0)),
            ],
            out_specs=[
                pl.BlockSpec((1, 1, C, W), lambda b, h, s: (b, h, 0, 0)),
                pl.BlockSpec((1, 1, C, W), lambda b, h, s: (b, h, 0, 0)),
            ],
        ),
        compiler_params=pltpu.CompilerParams(
            dimension_semantics=("parallel", "parallel", "arbitrary"),
            vmem_limit_bytes=int(max(32 << 20, min(100 << 20, 0.75 * vmem_cap))),
        ),
        cost_estimate=pl.CostEstimate(
            flops=18 * B * C * H * W,
            transcendentals=B * C * H * W,
            bytes_accessed=(B * C * H * W * x_item + B * H * W * t_item
                            + 2 * B * nsplit * C * W * 4),
        ),
    )(outputs, t)

    # Tiny final reduction in JAX glue (spatial splits + lane axis).
    inter = jnp.sum(inter, axis=(1, 3))            # (B, C)
    total = jnp.sum(total, axis=(1, 3))            # (B, C)
    union = total - inter
    eps = jnp.float32(1e-24)
    loss = jnp.mean((inter + eps) / (union + eps))
    return (jnp.float32(1.0) - loss).astype(jnp.float32)


def _iou_loss_ref(outputs, targets, n_class):
    # Pure-JAX reference matching the PyTorch module.
    p = jax.nn.softmax(outputs.astype(jnp.float32), axis=1)
    onehot = jax.nn.one_hot(targets, n_class, axis=1, dtype=jnp.float32)
    inter = jnp.sum(p * onehot, axis=(2, 3))
    total = jnp.sum(p + onehot, axis=(2, 3))
    union = total - inter
    loss = jnp.mean((inter + 1e-24) / (union + 1e-24))
    return 1.0 - loss


if __name__ == "__main__":
    key = jax.random.PRNGKey(0)
    k1, k2, k3, k4 = jax.random.split(key, 4)

    # Case 1: nominal small shape (B=2, C=4, 16x16), int32 targets.
    n_class = 4
    B, H, W = 2, 16, 16
    outputs = jax.random.normal(k1, (B, n_class, H, W), dtype=jnp.float32)
    targets = jax.random.randint(k2, (B, H, W), 0, n_class, dtype=jnp.int32)
    got = jax.block_until_ready(iou_loss(outputs, targets, n_class))
    want = jax.block_until_ready(_iou_loss_ref(outputs, targets, n_class))
    assert jnp.allclose(got, want, atol=1e-5, rtol=1e-5), (got, want)

    # Case 2: ragged row tiles, odd batch (2-way spatial split over cores),
    # non-128 width, int8 targets — exercises tail-masking and split paths.
    n_class2 = 3
    B2, H2, W2 = 1, 100, 24
    outputs2 = jax.random.normal(k3, (B2, n_class2, H2, W2), dtype=jnp.float32)
    targets2 = jax.random.randint(k4, (B2, H2, W2), 0, n_class2,
                                  dtype=jnp.int32).astype(jnp.int8)
    got2 = jax.block_until_ready(
        iou_loss(outputs2, targets2, n_class2, max_tile_rows=32))
    want2 = jax.block_until_ready(_iou_loss_ref(outputs2, targets2, n_class2))
    assert jnp.allclose(got2, want2, atol=1e-5, rtol=1e-5), (got2, want2)

    print("KERNEL_OK")
</pallas_src>

<mosaic_0001>
module attributes {stable_mosaic.version = 11 : i64} {
  func.func @_iou_kernel(%arg0: i32, %arg1: i32, %arg2: i32, %arg3: memref<1x4x16x16xf32, #tpu.memory_space<vmem>>, %arg4: memref<1x1x16x16xi32, #tpu.memory_space<vmem>>, %arg5: memref<1x1x4x16xf32, #tpu.memory_space<vmem>>, %arg6: memref<1x1x4x16xf32, #tpu.memory_space<vmem>>) attributes {dimension_semantics = [#tpu.dimension_semantics<parallel>, #tpu.dimension_semantics<parallel>, #tpu.dimension_semantics<arbitrary>], iteration_bounds = array<i64: 2, 1, 1>, scalar_prefetch = 0 : i64, scratch_operands = 0 : i64, tpu.core_type = #tpu.core_type<tc>, window_params = [{transform_indices = @transform_0, window_bounds = array<i64: 1, 4, 16, 16>}, {transform_indices = @transform_1, window_bounds = array<i64: 1, 1, 16, 16>}, {transform_indices = @transform_2, window_bounds = array<i64: 1, 1, 4, 16>}, {transform_indices = @transform_3, window_bounds = array<i64: 1, 1, 4, 16>}]} {
    %c0_i32 = arith.constant 0 : i32
    %0 = arith.cmpi eq, %arg2, %c0_i32 : i32
    %1 = arith.extui %0 : i1 to i32
    %c0_i32_0 = arith.constant 0 : i32
    %2 = arith.cmpi ne, %1, %c0_i32_0 : i32
    scf.if %2 {
      %cst_66 = arith.constant 0.000000e+00 : f32
      %91 = vector.broadcast %cst_66 : f32 to vector<1x1x4x16xf32>
      %c0_67 = arith.constant 0 : index
      %c0_68 = arith.constant 0 : index
      %c0_69 = arith.constant 0 : index
      %c0_70 = arith.constant 0 : index
      %92 = vector.load %arg5[%c0_67, %c0_68, %c0_69, %c0_70] : memref<1x1x4x16xf32, #tpu.memory_space<vmem>>, vector<1x1x4x16xf32>
      tpu.vector_store %arg5[%c0_67, %c0_68, %c0_69, %c0_70], %91 {strides = array<i32>} : memref<1x1x4x16xf32, #tpu.memory_space<vmem>>, vector<1x1x4x16xf32>,
      %cst_71 = arith.constant 0.000000e+00 : f32
      %93 = vector.broadcast %cst_71 : f32 to vector<1x1x4x16xf32>
      %c0_72 = arith.constant 0 : index
      %c0_73 = arith.constant 0 : index
      %c0_74 = arith.constant 0 : index
      %c0_75 = arith.constant 0 : index
      %94 = vector.load %arg6[%c0_72, %c0_73, %c0_74, %c0_75] : memref<1x1x4x16xf32, #tpu.memory_space<vmem>>, vector<1x1x4x16xf32>
      tpu.vector_store %arg6[%c0_72, %c0_73, %c0_74, %c0_75], %93 {strides = array<i32>} : memref<1x1x4x16xf32, #tpu.memory_space<vmem>>, vector<1x1x4x16xf32>,
    } else {
    }
    %c0 = arith.constant 0 : index
    %c0_1 = arith.constant 0 : index
    %c0_2 = arith.constant 0 : index
    %c0_3 = arith.constant 0 : index
    %3 = vector.load %arg3[%c0, %c0_1, %c0_2, %c0_3] : memref<1x4x16x16xf32, #tpu.memory_space<vmem>>, vector<1x1x16x16xf32>
    %4 = vector.shape_cast %3 : vector<1x1x16x16xf32> to vector<16x16xf32>
    %c0_4 = arith.constant 0 : index
    %c1 = arith.constant 1 : index
    %c0_5 = arith.constant 0 : index
    %c0_6 = arith.constant 0 : index
    %5 = vector.load %arg3[%c0_4, %c1, %c0_5, %c0_6] : memref<1x4x16x16xf32, #tpu.memory_space<vmem>>, vector<1x1x16x16xf32>
    %6 = vector.shape_cast %5 : vector<1x1x16x16xf32> to vector<16x16xf32>
    %7 = arith.maximumf %4, %6 : vector<16x16xf32>
    %c0_7 = arith.constant 0 : index
    %c2 = arith.constant 2 : index
    %c0_8 = arith.constant 0 : index
    %c0_9 = arith.constant 0 : index
    %8 = vector.load %arg3[%c0_7, %c2, %c0_8, %c0_9] : memref<1x4x16x16xf32, #tpu.memory_space<vmem>>, vector<1x1x16x16xf32>
    %9 = vector.shape_cast %8 : vector<1x1x16x16xf32> to vector<16x16xf32>
    %10 = arith.maximumf %7, %9 : vector<16x16xf32>
    %c0_10 = arith.constant 0 : index
    %c3 = arith.constant 3 : index
    %c0_11 = arith.constant 0 : index
    %c0_12 = arith.constant 0 : index
    %11 = vector.load %arg3[%c0_10, %c3, %c0_11, %c0_12] : memref<1x4x16x16xf32, #tpu.memory_space<vmem>>, vector<1x1x16x16xf32>
    %12 = vector.shape_cast %11 : vector<1x1x16x16xf32> to vector<16x16xf32>
    %13 = arith.maximumf %10, %12 : vector<16x16xf32>
    %c0_13 = arith.constant 0 : index
    %c0_14 = arith.constant 0 : index
    %c0_15 = arith.constant 0 : index
    %c0_16 = arith.constant 0 : index
    %14 = vector.load %arg3[%c0_13, %c0_14, %c0_15, %c0_16] : memref<1x4x16x16xf32, #tpu.memory_space<vmem>>, vector<1x1x16x16xf32>
    %15 = vector.shape_cast %14 : vector<1x1x16x16xf32> to vector<16x16xf32>
    %16 = arith.subf %15, %13 : vector<16x16xf32>
    %17 = math.exp %16 : vector<16x16xf32>
    %c0_17 = arith.constant 0 : index
    %c1_18 = arith.constant 1 : index
    %c0_19 = arith.constant 0 : index
    %c0_20 = arith.constant 0 : index
    %18 = vector.load %arg3[%c0_17, %c1_18, %c0_19, %c0_20] : memref<1x4x16x16xf32, #tpu.memory_space<vmem>>, vector<1x1x16x16xf32>
    %19 = vector.shape_cast %18 : vector<1x1x16x16xf32> to vector<16x16xf32>
    %20 = arith.subf %19, %13 : vector<16x16xf32>
    %21 = math.exp %20 : vector<16x16xf32>
    %c0_21 = arith.constant 0 : index
    %c2_22 = arith.constant 2 : index
    %c0_23 = arith.constant 0 : index
    %c0_24 = arith.constant 0 : index
    %22 = vector.load %arg3[%c0_21, %c2_22, %c0_23, %c0_24] : memref<1x4x16x16xf32, #tpu.memory_space<vmem>>, vector<1x1x16x16xf32>
    %23 = vector.shape_cast %22 : vector<1x1x16x16xf32> to vector<16x16xf32>
    %24 = arith.subf %23, %13 : vector<16x16xf32>
    %25 = math.exp %24 : vector<16x16xf32>
    %c0_25 = arith.constant 0 : index
    %c3_26 = arith.constant 3 : index
    %c0_27 = arith.constant 0 : index
    %c0_28 = arith.constant 0 : index
    %26 = vector.load %arg3[%c0_25, %c3_26, %c0_27, %c0_28] : memref<1x4x16x16xf32, #tpu.memory_space<vmem>>, vector<1x1x16x16xf32>
    %27 = vector.shape_cast %26 : vector<1x1x16x16xf32> to vector<16x16xf32>
    %28 = arith.subf %27, %13 : vector<16x16xf32>
    %29 = math.exp %28 : vector<16x16xf32>
    %30 = arith.addf %17, %21 : vector<16x16xf32>
    %31 = arith.addf %30, %25 : vector<16x16xf32>
    %32 = arith.addf %31, %29 : vector<16x16xf32>
    %33 = tpu.reciprocal %32 : vector<16x16xf32> -> vector<16x16xf32>
    %c0_29 = arith.constant 0 : index
    %c0_30 = arith.constant 0 : index
    %c0_31 = arith.constant 0 : index
    %c0_32 = arith.constant 0 : index
    %34 = vector.load %arg4[%c0_29, %c0_30, %c0_31, %c0_32] : memref<1x1x16x16xi32, #tpu.memory_space<vmem>>, vector<1x1x16x16xi32>
    %35 = vector.shape_cast %34 : vector<1x1x16x16xi32> to vector<16x16xi32>
    %cst = arith.constant 1.000000e+00 : f32
    %36 = vector.broadcast %cst : f32 to vector<1x16xf32>
    %37 = arith.mulf %17, %33 : vector<16x16xf32>
    %c0_i32_33 = arith.constant 0 : i32
    %38 = vector.broadcast %c0_i32_33 : i32 to vector<16x16xi32>
    %39 = arith.cmpi eq, %35, %38 : vector<16x16xi32>
    %cst_34 = arith.constant 0.000000e+00 : f32
    %40 = vector.broadcast %cst_34 : f32 to vector<16x16xf32>
    %41 = arith.select %39, %37, %40 : vector<16x16xi1>, vector<16x16xf32>
    %cst_35 = arith.constant 1.000000e+00 : f32
    %42 = vector.broadcast %cst_35 : f32 to vector<16x16xf32>
    %43 = arith.addf %37, %42 : vector<16x16xf32>
    %44 = arith.select %39, %43, %37 : vector<16x16xi1>, vector<16x16xf32>
    %cst_36 = arith.constant dense<0.000000e+00> : vector<1x16xf32>
    %45 = tpu.matmul %36, %41, %cst_36 {dimension_numbers = #tpu.dot_dimension_numbers<[1], [0], [0], [1], [0, 0, 1, 1], [], []>} : vector<1x16xf32>, vector<16x16xf32>, vector<1x16xf32> -> vector<1x16xf32>
    %cst_37 = arith.constant dense<0.000000e+00> : vector<1x16xf32>
    %46 = tpu.matmul %36, %44, %cst_37 {dimension_numbers = #tpu.dot_dimension_numbers<[1], [0], [0], [1], [0, 0, 1, 1], [], []>} : vector<1x16xf32>, vector<16x16xf32>, vector<1x16xf32> -> vector<1x16xf32>
    %47 = arith.mulf %21, %33 : vector<16x16xf32>
    %c1_i32 = arith.constant 1 : i32
    %48 = vector.broadcast %c1_i32 : i32 to vector<16x16xi32>
    %49 = arith.cmpi eq, %35, %48 : vector<16x16xi32>
    %cst_38 = arith.constant 0.000000e+00 : f32
    %50 = vector.broadcast %cst_38 : f32 to vector<16x16xf32>
    %51 = arith.select %49, %47, %50 : vector<16x16xi1>, vector<16x16xf32>
    %cst_39 = arith.constant 1.000000e+00 : f32
    %52 = vector.broadcast %cst_39 : f32 to vector<16x16xf32>
    %53 = arith.addf %47, %52 : vector<16x16xf32>
    %54 = arith.select %49, %53, %47 : vector<16x16xi1>, vector<16x16xf32>
    %cst_40 = arith.constant dense<0.000000e+00> : vector<1x16xf32>
    %55 = tpu.matmul %36, %51, %cst_40 {dimension_numbers = #tpu.dot_dimension_numbers<[1], [0], [0], [1], [0, 0, 1, 1], [], []>} : vector<1x16xf32>, vector<16x16xf32>, vector<1x16xf32> -> vector<1x16xf32>
    %cst_41 = arith.constant dense<0.000000e+00> : vector<1x16xf32>
    %56 = tpu.matmul %36, %54, %cst_41 {dimension_numbers = #tpu.dot_dimension_numbers<[1], [0], [0], [1], [0, 0, 1, 1], [], []>} : vector<1x16xf32>, vector<16x16xf32>, vector<1x16xf32> -> vector<1x16xf32>
    %57 = arith.mulf %25, %33 : vector<16x16xf32>
    %c2_i32 = arith.constant 2 : i32
    %58 = vector.broadcast %c2_i32 : i32 to vector<16x16xi32>
    %59 = arith.cmpi eq, %35, %58 : vector<16x16xi32>
    %cst_42 = arith.constant 0.000000e+00 : f32
    %60 = vector.broadcast %cst_42 : f32 to vector<16x16xf32>
    %61 = arith.select %59, %57, %60 : vector<16x16xi1>, vector<16x16xf32>
    %cst_43 = arith.constant 1.000000e+00 : f32
    %62 = vector.broadcast %cst_43 : f32 to vector<16x16xf32>
    %63 = arith.addf %57, %62 : vector<16x16xf32>
    %64 = arith.select %59, %63, %57 : vector<16x16xi1>, vector<16x16xf32>
    %cst_44 = arith.constant dense<0.000000e+00> : vector<1x16xf32>
    %65 = tpu.matmul %36, %61, %cst_44 {dimension_numbers = #tpu.dot_dimension_numbers<[1], [0], [0], [1], [0, 0, 1, 1], [], []>} : vector<1x16xf32>, vector<16x16xf32>, vector<1x16xf32> -> vector<1x16xf32>
    %cst_45 = arith.constant dense<0.000000e+00> : vector<1x16xf32>
    %66 = tpu.matmul %36, %64, %cst_45 {dimension_numbers = #tpu.dot_dimension_numbers<[1], [0], [0], [1], [0, 0, 1, 1], [], []>} : vector<1x16xf32>, vector<16x16xf32>, vector<1x16xf32> -> vector<1x16xf32>
    %67 = arith.mulf %29, %33 : vector<16x16xf32>
    %c3_i32 = arith.constant 3 : i32
    %68 = vector.broadcast %c3_i32 : i32 to vector<16x16xi32>
    %69 = arith.cmpi eq, %35, %68 : vector<16x16xi32>
    %cst_46 = arith.constant 0.000000e+00 : f32
    %70 = vector.broadcast %cst_46 : f32 to vector<16x16xf32>
    %71 = arith.select %69, %67, %70 : vector<16x16xi1>, vector<16x16xf32>
    %cst_47 = arith.constant 1.000000e+00 : f32
    %72 = vector.broadcast %cst_47 : f32 to vector<16x16xf32>
    %73 = arith.addf %67, %72 : vector<16x16xf32>
    %74 = arith.select %69, %73, %67 : vector<16x16xi1>, vector<16x16xf32>
    %cst_48 = arith.constant dense<0.000000e+00> : vector<1x16xf32>
    %75 = tpu.matmul %36, %71, %cst_48 {dimension_numbers = #tpu.dot_dimension_numbers<[1], [0], [0], [1], [0, 0, 1, 1], [], []>} : vector<1x16xf32>, vector<16x16xf32>, vector<1x16xf32> -> vector<1x16xf32>
    %cst_49 = arith.constant dense<0.000000e+00> : vector<1x16xf32>
    %76 = tpu.matmul %36, %74, %cst_49 {dimension_numbers = #tpu.dot_dimension_numbers<[1], [0], [0], [1], [0, 0, 1, 1], [], []>} : vector<1x16xf32>, vector<16x16xf32>, vector<1x16xf32> -> vector<1x16xf32>
    %c0_50 = arith.constant 0 : index
    %c0_51 = arith.constant 0 : index
    %c0_52 = arith.constant 0 : index
    %c0_53 = arith.constant 0 : index
    %77 = vector.load %arg5[%c0_50, %c0_51, %c0_52, %c0_53] : memref<1x1x4x16xf32, #tpu.memory_space<vmem>>, vector<1x1x4x16xf32>
    %78 = vector.shape_cast %77 : vector<1x1x4x16xf32> to vector<4x16xf32>
    %79 = tpu.concatenate %45, %55, %65, %75 in 0 : vector<1x16xf32>, vector<1x16xf32>, vector<1x16xf32>, vector<1x16xf32> -> vector<4x16xf32>
    %80 = arith.addf %78, %79 : vector<4x16xf32>
    %c0_54 = arith.constant 0 : index
    %c0_55 = arith.constant 0 : index
    %c0_56 = arith.constant 0 : index
    %c0_57 = arith.constant 0 : index
    %81 = vector.load %arg5[%c0_54, %c0_55, %c0_56, %c0_57] : memref<1x1x4x16xf32, #tpu.memory_space<vmem>>, vector<1x1x4x16xf32>
    %82 = vector.shape_cast %81 : vector<1x1x4x16xf32> to vector<4x16xf32>
    %83 = vector.shape_cast %80 : vector<4x16xf32> to vector<1x1x4x16xf32>
    tpu.vector_store %arg5[%c0_54, %c0_55, %c0_56, %c0_57], %83 {strides = array<i32>} : memref<1x1x4x16xf32, #tpu.memory_space<vmem>>, vector<1x1x4x16xf32>,
    %c0_58 = arith.constant 0 : index
    %c0_59 = arith.constant 0 : index
    %c0_60 = arith.constant 0 : index
    %c0_61 = arith.constant 0 : index
    %84 = vector.load %arg6[%c0_58, %c0_59, %c0_60, %c0_61] : memref<1x1x4x16xf32, #tpu.memory_space<vmem>>, vector<1x1x4x16xf32>
    %85 = vector.shape_cast %84 : vector<1x1x4x16xf32> to vector<4x16xf32>
    %86 = tpu.concatenate %46, %56, %66, %76 in 0 : vector<1x16xf32>, vector<1x16xf32>, vector<1x16xf32>, vector<1x16xf32> -> vector<4x16xf32>
    %87 = arith.addf %85, %86 : vector<4x16xf32>
    %c0_62 = arith.constant 0 : index
    %c0_63 = arith.constant 0 : index
    %c0_64 = arith.constant 0 : index
    %c0_65 = arith.constant 0 : index
    %88 = vector.load %arg6[%c0_62, %c0_63, %c0_64, %c0_65] : memref<1x1x4x16xf32, #tpu.memory_space<vmem>>, vector<1x1x4x16xf32>
    %89 = vector.shape_cast %88 : vector<1x1x4x16xf32> to vector<4x16xf32>
    %90 = vector.shape_cast %87 : vector<4x16xf32> to vector<1x1x4x16xf32>
    tpu.vector_store %arg6[%c0_62, %c0_63, %c0_64, %c0_65], %90 {strides = array<i32>} : memref<1x1x4x16xf32, #tpu.memory_space<vmem>>, vector<1x1x4x16xf32>,
    return
  }
  func.func @transform_0(%arg0: i32, %arg1: i32, %arg2: i32) -> (i32, i32, i32, i32) {
    %c1_i32 = arith.constant 1 : i32
    %0 = arith.muli %arg1, %c1_i32 : i32
    %1 = arith.addi %0, %arg2 : i32
    %c0_i32 = arith.constant 0 : i32
    %c0_i32_0 = arith.constant 0 : i32
    %c0_i32_1 = arith.constant 0 : i32
    return %arg0, %c0_i32, %1, %c0_i32_0 : i32, i32, i32, i32
  }
  func.func @transform_1(%arg0: i32, %arg1: i32, %arg2: i32) -> (i32, i32, i32, i32) {
    %c1_i32 = arith.constant 1 : i32
    %0 = arith.muli %arg1, %c1_i32 : i32
    %1 = arith.addi %0, %arg2 : i32
    %c0_i32 = arith.constant 0 : i32
    %c0_i32_0 = arith.constant 0 : i32
    %c0_i32_1 = arith.constant 0 : i32
    return %arg0, %c0_i32, %1, %c0_i32_0 : i32, i32, i32, i32
  }
  func.func @transform_2(%arg0: i32, %arg1: i32, %arg2: i32) -> (i32, i32, i32, i32) {
    %c0_i32 = arith.constant 0 : i32
    %c0_i32_0 = arith.constant 0 : i32
    %c0_i32_1 = arith.constant 0 : i32
    return %arg0, %arg1, %c0_i32, %c0_i32_0 : i32, i32, i32, i32
  }
  func.func @transform_3(%arg0: i32, %arg1: i32, %arg2: i32) -> (i32, i32, i32, i32) {
    %c0_i32 = arith.constant 0 : i32
    %c0_i32_0 = arith.constant 0 : i32
    %c0_i32_1 = arith.constant 0 : i32
    return %arg0, %arg1, %c0_i32, %c0_i32_0 : i32, i32, i32, i32
  }
}

</mosaic_0001>

<bundles_post_ra>
// kernel: tpu_custom_call.1
= control target key start
LH: loop header
LB: loop body
LE: loop exit
PB: predicated region body
PF: predicated region fallthrough
CT: control target
= control target key end

     0   :  { %s1354_s0 = inlined_call_operand.hbm [shape: f32[2,4,16,16], index: 0, kind: input, shape index: {}]   ;;  %s1355_s1 = inlined_call_operand.hbm [shape: s32[2,1,16,16], index: 1, kind: input, shape index: {}]   ;;  %s1356_s2 = inlined_call_operand.hbm [shape: f32[2,1,4,16], index: 2, kind: output, shape index: {0}]   ;;  %s1357_s3 = inlined_call_operand.hbm [shape: f32[2,1,4,16], index: 3, kind: output, shape index: {1}]  }
   0x1   :  { %1358 = sst [smem:[#allocation14_spill]] %s1354_s0 }
   0x2   :  { %9 = vsyncpa [#allocation3], 0 }
   0x3   :  { %11 = vsyncpa [#allocation3 + $0x1], 0 }
   0x4   :  { %12 = vsyncpa [#allocation6], 0 }
   0x5   :  { %14 = vsyncpa [#allocation6 + $0x1], 0 }
   0x6   :  { %15 = vsyncpa [#allocation4], 0 }
   0x7   :  { %17 = vsyncpa [#allocation4 + $0x1], 0 }
   0x8   :  { %18 = vsyncpa [#allocation9], 0 }
   0x9   :  { %20 = vsyncpa [#allocation9 + $0x1], 0  ;;  %s1136_s12 = smov 0   ;;  %s1138_s13 = smov 0  }
   0xa   :  { %s1140_s14 = smov 0   ;;  %s1142_s15 = smov 0  }
   0xb   :  { %s1144_s16 = smov 0   ;;  %s1146_s17 = smov 0  }
   0xc LB: > { %s791_s18 = sadd.s32 4294967295, %s1110_s17   ;;  %s792_s19 = sadd.s32 4294967294, %s1110_s17   ;;  %s1110_s17 = sphi %s1146_s17, %s26_s17   ;;  %s1106_s16 = sphi %s1144_s16, %s1371_s16   ;;  %s1102_s15 = sphi %s1142_s15, %s1370_s15   ;;  %s1098_s14 = sphi %s1140_s14, %s1369_s14   ;;  %s1094_s13 = sphi %s1138_s13, %s1368_s13   ;;  %s1090_s12 = sphi %s1136_s12, %s1367_s12  }
   0xd   : > { %s45_s20 = sadd.s32 1, %s1106_s16  ;;  %s56_s21 = sadd.s32 1, %s1098_s14 }
   0xe   : > { %p47_p0 = scmp.ge.s32.totalorder %s45_s20, 2  ;;  %p63_p1 = scmp.ne.s32.totalorder %s1098_s14, %s1094_s13 }
   0xf   : > { %p64_p2 = scmp.eq.s32.totalorder %s1110_s17, 0  ;;  %p69_p3 = scmp.ne.s32.totalorder %s1094_s13, %s1090_s12 }
  0x10   : > { %s1373_s20 = smov (%p47_p0, %s45_s20), 0  ;;  %p70_p5 = scmp.eq.s32.totalorder %s791_s18, 0 }
  0x11   : > { %p1177_p4 = por %p64_p2, %p63_p1  ;;  %s51_s23 = ssub.s32 %s1106_s16, %s1373_s20 }
  0x12   : > { %p125_p6 = scmp.eq.s32.totalorder %s791_s18, 1  ;;  %p54_p7 = scmp.eq.s32.totalorder %s51_s23, 0 }
  0x13   : > { %p1183_p8 = por %p70_p5, %p69_p3  ;;  %p131_p10 = scmp.eq.s32.totalorder %s792_s19, 1 }
  0x14   : > { %p1187_p9 = por %p125_p6, %p63_p1  ;;  %p794_p12 = scmp.ge.s32.totalorder %s1110_s17, 2 }
  0x15   : > { %s1192_s26 = scalar_select %p54_p7, %s1098_s14, %s56_s21  }
  0x16   : > { %p1194_p11 = por %p131_p10, %p69_p3  ;;  %p858_p13 = scmp.lt.s32.totalorder %s1110_s17, 2 }
  0x17   : > { %s1201_s28 = sand.u32 1, %s1098_s14   ;;  %s834_s30 = sshll.u32 %s1106_s16, 6 }
  0x18   : > { %s795_s29 = sshll.u32 %s1201_s28, 6  ;;  %s1363_s0 = sld [smem:[#allocation14_spill]] }
  0x19   : > { %s183_s7 = scalar_lea.vmem [#allocation2], %s795_s29  ;;  %p1210_p0 = pnand %p858_p13, %p1177_p4 }
  0x1a   : > { %s194_s8 = sshll.u32 %s183_s7, 4  ;;  %p801_p1 = scmp.ge.s32.totalorder %s1110_s17, 1  ;;  %s195_s8 = int_to_ptr.vmem [resolvable:$true] %s194_s8 }
  0x1b   : > { %s180_s11 = scalar_lea.sflag [#allocation3], %s1201_s28  ;;  %s1112_s18 = smov 128  }
  0x1c   : > { %s1113_s19 = smov 8   ;;  %p227_p2 = scmp.lt.s32.totalorder %s1110_s17, 3 }
  0x1d   : > { %s798_s21 = sshll.u32 %s1201_s28, 4  ;;  %s835_s23 = sshll.u32 %s1106_s16, 4 }
  0x1e   : > { %s191_s6 = scalar_lea.hbm %s1363_s0, %s834_s30  ;;  %p228_p3 = pnand %p801_p1, %p227_p2 }
  0x1f   : > { %s192_s9 = sshll.u32 %s191_s6, 4  ;;  %s216_s22 = scalar_lea.hbm %s1355_s1, %s835_s23  ;;  %s193_s9 = int_to_ptr.hbm [resolvable:$true] %s192_s9 }
  0x20   : > { %847 = dma.hbm_to_vmem [thread:$0]  (!%p1210_p0), %s193_s9, 1024, %s195_s8, %s180_s11, %s1112_s18, %s1112_s18, %s1113_s19  }
  0x21   : > { %s208_s4 = scalar_lea.vmem [#allocation5], %s798_s21  ;;  %s217_s6 = sshll.u32 %s216_s22, 4  ;;  %s218_s6 = int_to_ptr.hbm [resolvable:$true] %s217_s6 }
  0x22   : > { %s219_s5 = sshll.u32 %s208_s4, 4  ;;  %s205_s7 = scalar_lea.sflag [#allocation6], %s1201_s28  ;;  %s220_s5 = int_to_ptr.vmem [resolvable:$true] %s219_s5 }
  0x23   : > { %850 = dma.hbm_to_vmem [thread:$0]  (!%p1210_p0), %s218_s6, 256, %s220_s5, %s205_s7, %s1112_s18, %s1112_s18, %s1113_s19  }
  0x24   : > { %231 = sbr.rel (%p228_p3) target bundleno = 255 (0xff), region = 28  ;;  %s1228_s8 = sand.u32 (!%p228_p3), 1, %s1094_s13  }
  0x25   : > { %s802_s9 = sshll.u32 (!%p228_p3), %s1228_s8, 6  ;;  %s234_s11 = scalar_lea.sflag (!%p228_p3), [#allocation3], %s1228_s8 }
  0x26   : > { %s237_s0 = scalar_lea.vmem (!%p228_p3), [#allocation2], %s802_s9 }
  0x29   : > { %1073 = dma.done.wait (%p1183_p8), %s234_s11, 1024  }
  0x2a   : > { %1075 = vsyncadd (%p1183_p8), %s234_s11, 4294966272  ;;  %s803_s28 = sshll.u32 %s1228_s8, 4  ;;  %s244_s10 = scalar_lea.sflag [#allocation6], %s1228_s8 }
  0x2b   : > { %s1238_s18 = scalar_lea.vmem [#allocation5], %s803_s28 }
  0x2c   : > { %1077 = dma.done.wait (%p1183_p8), %s244_s10, 256  }
  0x2d   : > { %1079 = vsyncadd (%p1183_p8), %s244_s10, 4294967040  ;;  %v293_v0 = vld [vmem:[%s237_s0 + $0x8] sm:$0xff]  ;;  %v807_v1 = vld [vmem:[%s237_s0 + $0x18] sm:$0xff]  ;;  %vm379_vm12 = vcmask 130048   ;;  %s830_s21 = sshll.u32 %s1102_s15, 2  ;;  %s608_s11 = scalar_lea.sflag [#allocation4], %s1228_s8 }
  0x2e   : > { %v809_v2 = vld [vmem:[%s237_s0 + $0x28] sm:$0xff]  ;;  %v298_v3 = vmax.f32 %v293_v0, %v807_v1  ;;  %v292_v4 = vld [vmem:[%s237_s0] sm:$0xff]  ;;  %v806_v5 = vld [vmem:[%s237_s0 + $0x10] sm:$0xff]  ;;  %s624_s30 = scalar_lea.hbm %s1356_s2, %s830_s21  ;;  %s639_s5 = scalar_lea.hbm %s1357_s3, %s830_s21 }
  0x2f   : > { %v811_v6 = vld [vmem:[%s237_s0 + $0x38] sm:$0xff]  ;;  %v297_v7 = vmax.f32 %v292_v4, %v806_v5  ;;  %v808_v8 = vld [vmem:[%s237_s0 + $0x20] sm:$0xff]  ;;  %v810_v10 = vld [vmem:[%s237_s0 + $0x30] sm:$0xff]  ;;  %s804_s0 = sshll.u32 %s1228_s8, 2  ;;  %s628_s6 = sshll.u32 %s624_s30, 4  ;;  %s629_s6 = int_to_ptr.hbm [resolvable:$true] %s628_s6 }
  0x30   : > { %v303_v9 = vmax.f32 %v298_v3, %v809_v2  ;;  %v368_v54 = vld [vmem:[%s1238_s18 + $0x8] sm:$0xff]  ;;  %s1273_s24 = scalar_lea.vmem [#allocation7], %s804_s0  ;;  %s1277_s19 = scalar_lea.vmem [#allocation8], %s804_s0 }
  0x31   : > { %v302_v11 = vmax.f32 %v297_v7, %v808_v8  ;;  %vm372_vm6 = vcmp.eq.s32.totalorder %v368_v54, 0  ;;  %vm426_vm7 = vcmp.eq.s32.totalorder %v368_v54, 1  ;;  %vm526_vm13 = vcmp.eq.s32.totalorder %v368_v54, 3  ;;  %s626_s15 = sshll.u32 %s1273_s24, 4  ;;  %s641_s7 = sshll.u32 %s1277_s19, 4  ;;  %s627_s15 = int_to_ptr.vmem [resolvable:$true] %s626_s15  ;;  %s1300_s7 = int_to_ptr.vmem [resolvable:$true] %s641_s7 }
  0x32   : > { %v308_v12 = vmax.f32 %v303_v9, %v811_v6  ;;  %vm476_vm14 = vcmp.eq.s32.totalorder %v368_v54, 2  ;;  %s643_s9 = sshll.u32 %s639_s5, 4  ;;  %s1006_s28 = sshra.s32 %s629_s6, 4  ;;  %s1302_s9 = int_to_ptr.hbm [resolvable:$true] %s643_s9  ;;  %s1007_s28 = int_to_ptr.hbm [resolvable:$true] %s1006_s28 }
  0x33   : > { %v307_v13 = vmax.f32 %v302_v11, %v810_v10  ;;  %s1008_s10 = scalar_lea.hbm %s1007_s28, 4  ;;  %s1012_s21 = scalar_lea.hbm %s1356_s2, 8 }
  0x34   : > { %v310_v14 = vsub.f32 %v293_v0, %v308_v12  ;;  %v316_v15 = vsub.f32 %v807_v1, %v308_v12  ;;  %v322_v16 = vsub.f32 %v809_v2, %v308_v12  ;;  %v328_v17 = vsub.f32 %v811_v6, %v308_v12  ;;  %v367_v1 = vld [vmem:[%s1238_s18] sm:$0xff]  ;;  %p1009_p4 = scmp.ne.s32.totalorder %s1007_s28, %s1008_s10  ;;  %p1013_p7 = scmp.lt.s32.totalorder %s1007_s28, %s1356_s2 }
  0x35   : > { %v309_v18 = vsub.f32 %v292_v4, %v307_v13  ;;  %v315_v19 = vsub.f32 %v806_v5, %v307_v13  ;;  %v321_v23 = vsub.f32 %v808_v8, %v307_v13  ;;  %v327_v26 = vsub.f32 %v810_v10, %v307_v13  ;;  %p1014_p8 = scmp.lt.s32.totalorder %s1012_s21, %s1008_s10 }
  0x36   : > { %v313_v20 = vmul.f32 1.442695, %v310_v14  ;;  %v319_v21 = vmul.f32 1.442695, %v316_v15  ;;  %v325_v22 = vmul.f32 1.442695, %v322_v16  ;;  %p1010_p5 = pnand %p1009_p4, %p1187_p9 }
  0x37   : > { %v331_v24 = vmul.f32 1.442695, %v328_v17  ;;  %v311_v25 = vmul.f32 1.442695, %v309_v18  ;;  %v317_v27 = vmul.f32 1.442695, %v315_v19  ;;  %p1015_p10 = por %p1014_p8, %p1013_p7 }
  0x38   : > { %912 = vpow2.f32 %v313_v20  ;;  %v323_v28 = vmul.f32 1.442695, %v321_v23  ;;  %v329_v29 = vmul.f32 1.442695, %v327_v26  ;;  %vm371_vm10 = vcmp.eq.s32.totalorder %v367_v1, 0  ;;  %p1011_p6 = pneg %p1010_p5 }
  0x39   : > { %914 = vpow2.f32 %v319_v21  ;;  %vm425_vm11 = vcmp.eq.s32.totalorder %v367_v1, 1  ;;  %v1114_v19 = vmov 1.0   ;;  %vm475_vm15 = vcmp.eq.s32.totalorder %v367_v1, 2 }
  0x3a   : > { %916 = vpow2.f32 %v325_v22  ;;  %p1016_p13 = pnand %p1015_p10, %p1011_p6 }
  0x3b   : > { %918 = vpow2.f32 %v331_v24 }
  0x3c   : > { %920 = vpow2.f32 %v311_v25 }
  0x3d   : > { %922 = vpow2.f32 %v317_v27 }
  0x3e   : > { %v913_v30 = vpop.eup %912  ;;  %924 = vpow2.f32 %v323_v28  ;;  %v1115_v28 = vmov 0.0  }
  0x3f   : > { %v915_v31 = vpop.eup %914  ;;  %926 = vpow2.f32 %v329_v29 }
  0x40   : > { %v917_v32 = vpop.eup %916  ;;  %v334_v33 = vadd.f32 %v915_v31, %v913_v30 }
  0x41   : > { %v919_v34 = vpop.eup %918 }
  0x42   : > { %v921_v35 = vpop.eup %920  ;;  %v336_v36 = vadd.f32 %v917_v32, %v334_v33 }
  0x43   : > { %v923_v37 = vpop.eup %922 }
  0x44   : > { %v925_v38 = vpop.eup %924  ;;  %v338_v39 = vadd.f32 %v919_v34, %v336_v36  ;;  %v333_v40 = vadd.f32 %v923_v37, %v921_v35 }
  0x45   : > { %v927_v41 = vpop.eup %926 }
  0x46   : > { %928 = vrcp.f32 %v338_v39  ;;  %v335_v42 = vadd.f32 %v925_v38, %v333_v40  ;;  %v364_v46 = vand.u32 2147483648, %v338_v39  ;;  %vm358_vm0 = vweird.f32 %v338_v39 }
  0x47   : > { %v362_v48 = vand.u32 2147483647, %v338_v39 }
  0x48   : > { %v337_v43 = vadd.f32 %v927_v41, %v335_v42  ;;  %v365_v51 = vor.u32 1.1754944e-38, %v364_v46 }
  0x49   : > { %vm363_vm3 = vcmp.eq.f32.partialorder %v362_v48, 8.507059e+37 }
  0x4a   : > { %930 = vrcp.f32 %v337_v43  ;;  %v350_v55 = vand.u32 2147483648, %v337_v43  ;;  %vm344_vm4 = vweird.f32 %v337_v43  ;;  %v348_v57 = vand.u32 2147483647, %v337_v43 }
  0x4c   : > { %v929_v44 = vpop.eup %928  ;;  %v351_v0 = vor.u32 1.1754944e-38, %v350_v55  ;;  %vm349_vm9 = vcmp.eq.f32.partialorder %v348_v57, 8.507059e+37 }
  0x4d   : > { %v354_v45 = vmul.f32 %v929_v44, %v338_v39  ;;  %vm359_vm1 = vweird.f32 %v929_v44 }
  0x4e   : > { %vm360_vm2 = vmor %vm358_vm0, %vm359_vm1  ;;  %vm525_vm0 = vcmp.eq.s32.totalorder %v367_v1, 3  ;;  %vm289_vm1 = vcmask 125952  }
  0x4f   : > { %v355_v47 = vsub.f32 1.0, %v354_v45  ;;  %290 = vst.msk [vmem:[%s1273_s24] sm:$0xf] %vm289_vm1, %v1115_v28 }
  0x50   : > { %v931_v49 = vpop.eup %930  ;;  %291 = vst.msk [vmem:[%s1277_s19] sm:$0xf] %vm289_vm1, %v1115_v28 }
  0x51   : > { %v356_v50 = vmul.f32 %v929_v44, %v355_v47  ;;  %v340_v52 = vmul.f32 %v931_v49, %v337_v43  ;;  %vm345_vm5 = vweird.f32 %v931_v49 }
  0x52   : > { %vm1245_vm8 = vmor %vm344_vm4, %vm345_vm5  ;;  %vm587_vm4 = vcmask 1042432  }
  0x53   : > { %v357_v53 = vadd.f32 %v929_v44, %v356_v50  ;;  %v341_v56 = vsub.f32 1.0, %v340_v52 }
  0x55   : > { %v361_v58 = vsel %vm360_vm2, %v929_v44, %v357_v53  ;;  %v342_v60 = vmul.f32 %v931_v49, %v341_v56  ;;  %vm583_vm2 = vcmask 1040384  }
  0x56   : > { %v366_v59 = vsel %vm363_vm3, %v365_v51, %v361_v58  ;;  %vm585_vm3 = vcmask 1041408  }
  0x57   : > { %v370_v61 = vmul.f32 %v913_v30, %v366_v59  ;;  %v424_v62 = vmul.f32 %v915_v31, %v366_v59  ;;  %v343_v2 = vadd.f32 %v931_v49, %v342_v60  ;;  %v524_v3 = vmul.f32 %v919_v34, %v366_v59  ;;  %v592_v48 = vld [vmem:[%s1277_s19] sm:$0xf] }
  0x58   : > { %v474_v6 = vmul.f32 %v917_v32, %v366_v59 }
  0x59   : > { %812 = vmatpush.msk.msra.mxu0 %vm372_vm6, %v370_v61  ;;  %816 = vmatpush.msk.msra.mxu2 %vm426_vm7, %v424_v62  ;;  %v376_v4 = vadd.f32 1.0, %v370_v61  ;;  %v430_v5 = vadd.f32 1.0, %v424_v62  ;;  %v347_v7 = vsel %vm1245_vm8, %v931_v49, %v343_v2  ;;  %v530_v13 = vadd.f32 1.0, %v524_v3 }
  0x5a   : > { %v352_v8 = vsel %vm349_vm9, %v351_v0, %v347_v7  ;;  %v480_v16 = vadd.f32 1.0, %v474_v6 }
  0x5b   : > { %v378_v9 = vsel %vm372_vm6, %v376_v4, %v370_v61  ;;  %v432_v10 = vsel %vm426_vm7, %v430_v5, %v424_v62  ;;  %v369_v11 = vmul.f32 %v921_v35, %v352_v8  ;;  %v423_v12 = vmul.f32 %v923_v37, %v352_v8 }
  0x5c   : > { %417 = vmatpush.msra.mxu1 %v378_v9  ;;  %467 = vmatpush.msra.mxu3 %v432_v10  ;;  %v473_v14 = vmul.f32 %v925_v38, %v352_v8  ;;  %v523_v15 = vmul.f32 %v927_v41, %v352_v8  ;;  %v532_v24 = vsel %vm526_vm13, %v530_v13, %v524_v3  ;;  %v573_v41 = vld [vmem:[%s1273_s24] sm:$0xf] }
  0x5d   : > { %813 = vmatpush.msk.msra.mxu0 %vm371_vm10, %v369_v11  ;;  %817 = vmatpush.msk.msra.mxu2 %vm425_vm11, %v423_v12  ;;  %v375_v17 = vadd.f32 1.0, %v369_v11  ;;  %v429_v18 = vadd.f32 1.0, %v423_v12  ;;  %v482_v25 = vsel %vm476_vm14, %v480_v16, %v474_v6 }
  0x5e   : > { %814 = vmatmul.msk.f32.vlgmr.msra.gmra.mxu0 %vm379_vm12, %v1114_v19  ;;  %818 = vmatmul.msk.f32.vlgmr.msra.gmra.mxu2 %vm379_vm12, %v1114_v19  ;;  %v529_v20 = vadd.f32 1.0, %v523_v15  ;;  %v479_v21 = vadd.f32 1.0, %v473_v14 }
  0x5f   : > { %v377_v22 = vsel %vm371_vm10, %v375_v17, %v369_v11  ;;  %v431_v23 = vsel %vm425_vm11, %v429_v18, %v423_v12  ;;  %824 = vmatpush.msk.msrb.mxu2 %vm526_vm13, %v524_v3  ;;  %820 = vmatpush.msk.msrb.mxu0 %vm476_vm14, %v474_v6 }
  0x60   : > { %418 = vmatpush.msra.mxu1 %v377_v22  ;;  %468 = vmatpush.msra.mxu3 %v431_v23  ;;  %v531_v26 = vsel %vm525_vm0, %v529_v20, %v523_v15  ;;  %v481_v27 = vsel %vm475_vm15, %v479_v21, %v473_v14 }
  0x61   : > { %815 = vmatmul.msk.f32.vlgmr.msra.gmra.mxu1 %vm379_vm12, %v1114_v19  ;;  %819 = vmatmul.msk.f32.vlgmr.msra.gmra.mxu3 %vm379_vm12, %v1114_v19 }
  0x62   : > { %567 = vmatpush.msrb.mxu3 %v532_v24  ;;  %821 = vmatpush.msk.msrb.mxu0 %vm475_vm15, %v473_v14 }
  0x63   : > { %825 = vmatpush.msk.msrb.mxu2 %vm525_vm0, %v523_v15  ;;  %517 = vmatpush.msrb.mxu1 %v482_v25 }
  0x64   : > { %568 = vmatpush.msrb.mxu3 %v531_v26 }
  0x65   : > { %518 = vmatpush.msrb.mxu1 %v481_v27 }
  0x66   : > { %822 = vmatmul.msk.f32.vlgmr.msrb.gmra.mxu0 %vm379_vm12, %v1114_v19  ;;  %826 = vmatmul.msk.f32.vlgmr.msrb.gmra.mxu2 %vm379_vm12, %v1114_v19 }
  0x69   : > { %823 = vmatmul.msk.f32.vlgmr.msrb.gmra.mxu1 %vm379_vm12, %v1114_v19  ;;  %827 = vmatmul.msk.f32.vlgmr.msrb.gmra.mxu3 %vm379_vm12, %v1114_v19 }
  0xdb   : > { %v400_v29 = vpop.f32.mrf.mxu0 }
  0xde   : > { %v420_v30 = vpop.f32.mrf.mxu1 }
  0xe1   : > { %v450_v31 = vpop.f32.mrf.mxu2 }
  0xe2   : > { %v575_v32 = vrot.slane %v450_v31, 7 }
  0xe3   : > { %v500_v33 = vpop.f32.mrf.mxu0 }
  0xe4   : > { %v470_v34 = vpop.f32.mrf.mxu3  ;;  %v578_v35 = vrot.slane %v500_v33, 6  ;;  %v584_v38 = vsel %vm583_vm2, %v400_v29, %v575_v32 }
  0xe5   : > { %v594_v36 = vrot.slane %v470_v34, 7 }
  0xe6   : > { %v520_v37 = vpop.f32.mrf.mxu1  ;;  %v586_v43 = vsel %vm585_vm3, %v584_v38, %v578_v35 }
  0xe7   : > { %v597_v40 = vrot.slane %v520_v37, 6  ;;  %v602_v44 = vsel %vm583_vm2, %v420_v30, %v594_v36 }
  0xe9   : > { %v550_v39 = vpop.f32.mrf.mxu2  ;;  %v603_v50 = vsel %vm585_vm3, %v602_v44, %v597_v40 }
  0xea   : > { %v581_v42 = vrot.slane %v550_v39, 5 }
  0xec   : > { %v588_v45 = vsel %vm587_vm4, %v586_v43, %v581_v42  ;;  %v570_v46 = vpop.f32.mrf.mxu3 }
  0xed   : > { %v589_v47 = vadd.f32 %v588_v45, %v573_v41  ;;  %v600_v49 = vrot.slane %v570_v46, 5 }
  0xef   : > { %591 = vst.msk [vmem:[%s1273_s24] sm:$0xf] %vm289_vm1, %v589_v47  ;;  %v604_v51 = vsel %vm587_vm4, %v603_v50, %v600_v49 }
  0xf0   : > { %v605_v52 = vadd.f32 %v604_v51, %v592_v48 }
  0xf1   : > { %1019 = shalt.err (!%p1016_p13)
}
  0xf2   : > { %840 = dma.vmem_to_hbm [thread:$0]  (%p1187_p9), %s627_s15, 64, %s629_s6, %s608_s11   ;;  %606 = vst.msk [vmem:[%s1277_s19] sm:$0xf] %vm289_vm1, %v605_v52 }
  0xf3   : > { %s613_s29 = scalar_lea.sflag [#allocation9], %s1228_s8  ;;  %s1034_s30 = sshra.s32 %s1302_s9, 4  ;;  %s1035_s30 = int_to_ptr.hbm [resolvable:$true] %s1034_s30 }
  0xf4   : > { %s1036_s22 = scalar_lea.hbm %s1035_s30, 4  ;;  %s1040_s28 = scalar_lea.hbm %s1357_s3, 8 }
  0xf5   : > { %p1037_p0 = scmp.ne.s32.totalorder %s1035_s30, %s1036_s22  ;;  %p1041_p3 = scmp.lt.s32.totalorder %s1035_s30, %s1357_s3 }
  0xf6   : > { %p1042_p4 = scmp.lt.s32.totalorder %s1040_s28, %s1036_s22 }
  0xf7   : > { %p1038_p1 = pnand %p1037_p0, %p1187_p9 }
  0xf8   : > { %p1043_p5 = por %p1042_p4, %p1041_p3 }
  0xf9   : > { %p1039_p2 = pneg %p1038_p1 }
  0xfb   : > { %p1044_p6 = pnand %p1043_p5, %p1039_p2 }
  0xfd   : > { %1047 = shalt.err (!%p1044_p6)
}
  0xfe   : > { %841 = dma.vmem_to_hbm [thread:$0]  (%p1187_p9), %s1300_s7, 64, %s1302_s9, %s613_s29  }
  0xff PF: > { %s655_s8 = sand.u32 1, %s1090_s12   ;;  %p852_p7 = pnand %p794_p12, %p1194_p11 }
 0x100   : > { %s656_s19 = scalar_lea.sflag [#allocation4], %s655_s8 }
 0x101   : > { %p853_p8 = pneg %p852_p7 }
 0x103   : > { %1081 = dma.done.wait (%p853_p8), %s656_s19, 64  }
 0x104   : > { %1083 = vsyncadd (%p853_p8), %s656_s19, 4294967232  ;;  %s666_s15 = scalar_lea.sflag [#allocation9], %s655_s8 }
 0x105   : > { %1085 = dma.done.wait (%p853_p8), %s666_s15, 64  }
 0x106   : > { %1087 = vsyncadd (%p853_p8), %s666_s15, 4294967232  ;;  %s26_s17 = sadd.s32 1, %s1110_s17   ;;  %s1367_s12 = smov %s1094_s13 }
 0x107   : > { %p23_p10 = scmp.ge.s32.totalorder %s26_s17, 4   ;;  %s1368_s13 = smov %s1098_s14 }
 0x108   : > { %s1369_s14 = smov %s1192_s26  ;;  %s1370_s15 = smov %s1106_s16 }
 0x109   : > { %s1371_s16 = smov %s1373_s20  ;;  %25 = sbr.rel (!%p23_p10) target bundleno = 12 (0xc), region = 110 }
 0x10e   :  { %672 = vsyncpa [#allocation3], 1 }
 0x10f   :  { %674 = vsyncpa [#allocation3 + $0x1], 1 }
 0x110   :  { %675 = vsyncpa [#allocation6], 1 }
 0x111   :  { %677 = vsyncpa [#allocation6 + $0x1], 1 }
 0x112   :  { %678 = vsyncpa [#allocation4], 1 }
 0x113   :  { %680 = vsyncpa [#allocation4 + $0x1], 1 }
 0x114   :  { %681 = vsyncpa [#allocation9], 1 }
 0x115   :  { %683 = vsyncpa [#allocation9 + $0x1], 1 }

</bundles_post_ra>
